<compile_context>
chip_gen: v6e
topology: v6e:2x2x1
jax: 0.10.0
libtpu: 0.0.40
codegen_flags: <defaults>
</compile_context>

<pallas_src>
import functools
import math

import jax
import jax.numpy as jnp
from jax import lax
from jax.experimental import pallas as pl
from jax.experimental.pallas import tpu as pltpu


# --------------------------------------------------------------------------- #
# Kernel
# --------------------------------------------------------------------------- #
def bottleneck1d_kernel(x_ref, w1_ref, w2_ref, w3_ref, bias_ref, o_ref, *, L):
    # x_ref / o_ref : (Cin, T) bf16, T = Bt*L lanes (T % L == 0, T % 128 == 0 or full)
    # w1_ref        : (P, Cin)  bf16   conv1 1x1  (BN1 scale folded in)
    # w2_ref        : (P, 3P)   bf16   conv2 taps [t=-1 | t=0 | t=+1], BN2 folded
    # w3_ref        : (Cin, P)  bf16   conv3 1x1  (BN3 scale folded in)
    # bias_ref      : (max(P,Cin), 3) f32  packed per-channel biases [b1 | b2 | b3]
    P, Cin = w1_ref.shape
    _, T = x_ref.shape

    x_bf = x_ref[...]                                   # (Cin, T) bf16
    bias = bias_ref[...]
    b1 = bias[:P, 0:1]                                  # (P, 1)
    b2 = bias[:P, 1:2]                                  # (P, 1)
    b3 = bias[:Cin, 2:3]                                # (Cin, 1)

    # Lane position within each length-L sequence. Because T % L == 0, these
    # masks also zero the roll wrap-around at the tile edges.
    pos = lax.broadcasted_iota(jnp.int32, (1, T), 1) % L
    mask_lo = pos != 0            # this lane has a left neighbour in its sequence
    mask_hi = pos != (L - 1)      # this lane has a right neighbour in its sequence

    # ---- conv1 (1x1, BN1 folded) + bias + ReLU: one wide MXU matmul ----
    h = jnp.dot(w1_ref[...], x_bf, preferred_element_type=jnp.float32) + b1
    h = jnp.maximum(h, 0.0)                             # (P, T) f32

    # ---- conv2 (k=3, pad=1, stride=1) + BN2 + ReLU ----
    # Three shifted copies stacked along sublanes -> one fused MXU matmul.
    h_lm1 = jnp.where(mask_lo, pltpu.roll(h, shift=1, axis=1), 0.0)       # h[:, l-1]
    h_lp1 = jnp.where(mask_hi, pltpu.roll(h, shift=T - 1, axis=1), 0.0)   # h[:, l+1]
    h_stack = jnp.concatenate([h_lm1, h, h_lp1], axis=0).astype(jnp.bfloat16)  # (3P, T)
    h2 = jnp.dot(w2_ref[...], h_stack, preferred_element_type=jnp.float32) + b2
    h2 = jnp.maximum(h2, 0.0)                           # (P, T) f32

    # ---- conv3 (1x1, BN3 folded) + bias + residual + ReLU ----
    h3 = jnp.dot(w3_ref[...], h2.astype(jnp.bfloat16),
                 preferred_element_type=jnp.float32) + b3               # (Cin, T)
    o_ref[...] = jnp.maximum(h3 + x_bf.astype(jnp.float32), 0.0).astype(o_ref.dtype)


# --------------------------------------------------------------------------- #
# Tiling / hardware heuristics
# --------------------------------------------------------------------------- #
def _vmem_capacity_bytes():
    try:
        return int(pltpu.get_tpu_info().vmem_capacity_bytes)
    except Exception:
        return 64 << 20          # conservative default (v7x per-TC VMEM)


def _pick_batch_fold(N, Cin, P, L, *, budget_bytes, two_cores):
    """Pick how many length-L sequences (Bt) are folded into one lane tile.

    Constraints: tile width Bt*L must be a multiple of 128 (lane-dense stores)
    unless it covers the whole padded slab. Preferences: fit the VMEM budget;
    on 2-TC parts prefer an even number of grid steps; minimize batch padding;
    then maximize tile size."""
    step = 128 // math.gcd(L, 128)        # smallest Bt with (Bt*L) % 128 == 0

    def footprint(bt):
        T = bt * L
        io = 2 * 2 * Cin * T * 2                  # bf16 x + out blocks, double-buffered
        work = (2 * Cin + 5 * P) * T * 4          # f32 working set, upper bound
        return io + work

    bt_cap = step * pl.cdiv(N, step)              # no point exceeding padded N
    cands = list(range(step, bt_cap + 1, step))
    fits = [bt for bt in cands if footprint(bt) <= budget_bytes] or [step]

    def rank(bt):
        steps = pl.cdiv(N, bt)
        pad = bt * steps - N
        idle = 1 if (two_cores and steps % 2 == 1) else 0   # odd steps idle one TC
        return (idle, pad, -bt)

    return min(fits, key=rank)


# --------------------------------------------------------------------------- #
# Parameter folding (eval-mode BN -> conv weights, exact)
# --------------------------------------------------------------------------- #
def fold_bn_into_weights(params):
    P, Cin = params["w1"].shape
    w1f = (params["w1"] * params["s1"]).astype(jnp.bfloat16)                    # (P, Cin)
    w2f = (jnp.concatenate([params["w2a"], params["w2b"], params["w2c"]], axis=1)
           * params["s2"]).astype(jnp.bfloat16)                                 # (P, 3P)
    w3f = (params["w3"] * params["s3"]).astype(jnp.bfloat16)                    # (Cin, P)
    cmax = max(P, Cin)
    bias = jnp.zeros((cmax, 3), jnp.float32)
    bias = bias.at[:P, 0].set(params["b1"][:, 0])
    bias = bias.at[:P, 1].set(params["b2"][:, 0])
    bias = bias.at[:Cin, 2].set(params["b3"][:, 0])
    return w1f, w2f, w3f, bias


# --------------------------------------------------------------------------- #
# Wrapper
# --------------------------------------------------------------------------- #
def bottleneck1d(x, params):
    """x: (N, Cin, L) float32. params: conv weights + eval-mode BN scale/bias."""
    N, Cin, L = x.shape
    P = params["w1"].shape[0]

    w1f, w2f, w3f, bias = fold_bn_into_weights(params)
    cmax = bias.shape[0]

    vmem_cap = _vmem_capacity_bytes()
    two_cores = vmem_cap <= (64 << 20)            # v7x: 64 MiB/TC, 2 TCs/chip
    budget = (24 << 20) if two_cores else (40 << 20)
    vmem_limit = (40 << 20) if two_cores else (64 << 20)

    Bt = _pick_batch_fold(N, Cin, P, L, budget_bytes=budget, two_cores=two_cores)
    steps = pl.cdiv(N, Bt)
    Npad = steps * Bt
    T = Bt * L

    # One transpose outside the kernel to the channels x (batch*length) layout,
    # stored in bf16 (the kernel's HBM traffic is halved vs f32).
    x2 = jnp.transpose(x, (1, 0, 2))              # (Cin, N, L)
    if Npad != N:
        x2 = jnp.pad(x2, ((0, 0), (0, Npad - N), (0, 0)))
    x2 = x2.reshape(Cin, Npad * L).astype(jnp.bfloat16)

    invariant = lambda r, c: pl.BlockSpec((r, c), lambda i: (0, 0))

    out2 = pl.pallas_call(
        functools.partial(bottleneck1d_kernel, L=L),
        out_shape=jax.ShapeDtypeStruct((Cin, Npad * L), jnp.bfloat16),
        grid_spec=pltpu.PrefetchScalarGridSpec(
            num_scalar_prefetch=0,
            grid=(steps,),
            in_specs=[
                pl.BlockSpec((Cin, T), lambda i: (0, i)),   # activation lane tile
                invariant(P, Cin),        # conv1 weight (BN1 folded)
                invariant(P, 3 * P),      # conv2 taps, fused (BN2 folded)
                invariant(Cin, P),        # conv3 weight (BN3 folded)
                invariant(cmax, 3),       # packed biases [b1 | b2 | b3]
            ],
            out_specs=pl.BlockSpec((Cin, T), lambda i: (0, i)),
        ),
        compiler_params=pltpu.CompilerParams(
            dimension_semantics=("parallel",),
            vmem_limit_bytes=vmem_limit,
        ),
    )(x2, w1f, w2f, w3f, bias)

    out = out2.reshape(Cin, Npad, L)[:, :N, :].transpose(1, 0, 2)
    return out.astype(x.dtype)


# --------------------------------------------------------------------------- #
# Parameters + pure-JAX reference
# --------------------------------------------------------------------------- #
def make_params(key, inplanes, planes, eps=1e-5):
    ks = jax.random.split(key, 16)
    f = jnp.float32

    w1 = jax.random.normal(ks[0], (planes, inplanes), f) * 0.1            # conv1
    w2 = jax.random.normal(ks[1], (planes, planes, 3), f) * 0.1           # conv2 (Cout,Cin,K)
    w3 = jax.random.normal(ks[2], (inplanes, planes), f) * 0.1            # conv3

    def bn(kg, kb, km, kv, c):
        gamma = 1.0 + 0.1 * jax.random.normal(kg, (c,), f)
        beta = 0.1 * jax.random.normal(kb, (c,), f)
        mean = 0.1 * jax.random.normal(km, (c,), f)
        var = jnp.abs(jax.random.normal(kv, (c,), f)) + 0.5
        scale = gamma / jnp.sqrt(var + eps)
        bias = beta - mean * scale
        return scale.reshape(c, 1), bias.reshape(c, 1)

    s1, b1 = bn(ks[3], ks[4], ks[5], ks[6], planes)
    s2, b2 = bn(ks[7], ks[8], ks[9], ks[10], planes)
    s3, b3 = bn(ks[11], ks[12], ks[13], ks[14], inplanes)

    return {
        "w1": w1,
        "w2a": w2[:, :, 0], "w2b": w2[:, :, 1], "w2c": w2[:, :, 2],
        "w3": w3,
        "s1": s1, "b1": b1, "s2": s2, "b2": b2, "s3": s3, "b3": b3,
    }


def bottleneck1d_ref(x, p):
    """Pure-JAX reference for the PyTorch eval-mode Bottleneck1d.forward.

    Mirrors the kernel's numerics: eval-mode BN scales folded into the conv
    weights (exact algebra) and every matmul operand rounded to bf16 (what the
    kernel's bf16 storage / bf16 MXU inputs do), with f32 accumulation and f32
    elementwise math.  Structure (conv -> BN -> ReLU, x3, residual, ReLU)
    matches the module with stride=1, downsample=None, drop_path=None."""
    q = lambda a: a.astype(jnp.bfloat16).astype(jnp.float32)
    xq = q(x)
    w1 = q(p["w1"] * p["s1"])
    w2a = q(p["w2a"] * p["s2"])
    w2b = q(p["w2b"] * p["s2"])
    w2c = q(p["w2c"] * p["s2"])
    w3 = q(p["w3"] * p["s3"])

    h = jnp.einsum("pc,ncl->npl", w1, xq) + p["b1"][None]
    h = jnp.maximum(h, 0.0)

    hq = q(h)
    hp = jnp.pad(hq, ((0, 0), (0, 0), (1, 1)))
    L = x.shape[2]
    h2 = (
        jnp.einsum("pq,nql->npl", w2a, hp[:, :, 0:L])
        + jnp.einsum("pq,nql->npl", w2b, hp[:, :, 1:L + 1])
        + jnp.einsum("pq,nql->npl", w2c, hp[:, :, 2:L + 2])
    ) + p["b2"][None]
    h2 = jnp.maximum(h2, 0.0)

    h3 = jnp.einsum("cp,npl->ncl", w3, q(h2)) + p["b3"][None]
    return jnp.maximum(h3 + xq, 0.0)


if __name__ == "__main__":
    key = jax.random.PRNGKey(0)
    kx, kp = jax.random.split(key)

    N, inplanes, planes, L = 4, 32, 16, 128
    x = jax.random.normal(kx, (N, inplanes, L), jnp.float32)
    params = make_params(kp, inplanes, planes)

    out = jax.block_until_ready(bottleneck1d(x, params))
    ref = bottleneck1d_ref(x, params)

    assert out.shape == (N, inplanes, L)
    # Tolerance covers only the final bf16 output-store rounding; the matmul
    # operands of kernel and reference are bit-identical bf16 values.
    assert jnp.allclose(out, ref, atol=2e-2, rtol=2e-2), "mismatch vs reference"

    print("KERNEL_OK")
</pallas_src>

<mosaic_0001>
module attributes {stable_mosaic.version = 11 : i64} {
  func.func @bottleneck1d_kernel(%arg0: i32, %arg1: memref<32x256xbf16, #tpu.memory_space<vmem>>, %arg2: memref<16x32xbf16, #tpu.memory_space<vmem>>, %arg3: memref<16x48xbf16, #tpu.memory_space<vmem>>, %arg4: memref<32x16xbf16, #tpu.memory_space<vmem>>, %arg5: memref<32x3xf32, #tpu.memory_space<vmem>>, %arg6: memref<32x256xbf16, #tpu.memory_space<vmem>>) attributes {dimension_semantics = [#tpu.dimension_semantics<parallel>], iteration_bounds = array<i64: 2>, scalar_prefetch = 0 : i64, scratch_operands = 0 : i64, tpu.core_type = #tpu.core_type<tc>, window_params = [{transform_indices = @transform_0, window_bounds = array<i64: 32, 256>}, {pipeline_mode = #tpu.pipeline_mode<synchronous>, transform_indices = @transform_1, window_bounds = array<i64: 16, 32>}, {pipeline_mode = #tpu.pipeline_mode<synchronous>, transform_indices = @transform_2, window_bounds = array<i64: 16, 48>}, {pipeline_mode = #tpu.pipeline_mode<synchronous>, transform_indices = @transform_3, window_bounds = array<i64: 32, 16>}, {pipeline_mode = #tpu.pipeline_mode<synchronous>, transform_indices = @transform_4, window_bounds = array<i64: 32, 3>}, {transform_indices = @transform_5, window_bounds = array<i64: 32, 256>}]} {
    %c0 = arith.constant 0 : index
    %c0_0 = arith.constant 0 : index
    %0 = vector.load %arg1[%c0, %c0_0] : memref<32x256xbf16, #tpu.memory_space<vmem>>, vector<32x256xbf16>
    %c0_1 = arith.constant 0 : index
    %c0_2 = arith.constant 0 : index
    %1 = vector.load %arg5[%c0_1, %c0_2] : memref<32x3xf32, #tpu.memory_space<vmem>>, vector<32x3xf32>
    %2 = vector.extract_strided_slice %1 {offsets = [0, 0], sizes = [16, 1], strides = [1, 1]} : vector<32x3xf32> to vector<16x1xf32>
    %3 = vector.extract_strided_slice %1 {offsets = [0, 1], sizes = [16, 1], strides = [1, 1]} : vector<32x3xf32> to vector<16x1xf32>
    %4 = vector.extract_strided_slice %1 {offsets = [0, 2], sizes = [32, 1], strides = [1, 1]} : vector<32x3xf32> to vector<32x1xf32>
    %5 = tpu.iota {dimensions = array<i32: 1>} : vector<1x256xi32>
    %c128_i32 = arith.constant 128 : i32
    %c0_i32 = arith.constant 0 : i32
    %6 = arith.cmpi eq, %c128_i32, %c0_i32 : i32
    %c1_i32 = arith.constant 1 : i32
    %7 = arith.select %6, %c1_i32, %c128_i32 : i32
    %8 = vector.broadcast %7 : i32 to vector<1x256xi32>
    %9 = arith.remsi %5, %8 : vector<1x256xi32>
    %c0_i32_3 = arith.constant 0 : i32
    %10 = vector.broadcast %c0_i32_3 : i32 to vector<1x256xi32>
    %11 = arith.cmpi ne, %9, %10 : vector<1x256xi32>
    %c0_i32_4 = arith.constant 0 : i32
    %12 = vector.broadcast %c0_i32_4 : i32 to vector<1x256xi32>
    %13 = arith.cmpi slt, %9, %12 : vector<1x256xi32>
    %c0_i32_5 = arith.constant 0 : i32
    %14 = arith.cmpi slt, %7, %c0_i32_5 : i32
    %15 = vector.broadcast %14 : i1 to vector<1x256xi1>
    %16 = vector.broadcast %15 : vector<1x256xi1> to vector<1x256xi1>
    %17 = arith.xori %13, %16 : vector<1x256xi1>
    %18 = arith.andi %17, %11 : vector<1x256xi1>
    %19 = vector.broadcast %7 : i32 to vector<1x256xi32>
    %20 = arith.addi %9, %19 : vector<1x256xi32>
    %21 = arith.select %18, %20, %9 : vector<1x256xi1>, vector<1x256xi32>
    %c0_i32_6 = arith.constant 0 : i32
    %22 = vector.broadcast %c0_i32_6 : i32 to vector<1x256xi32>
    %23 = arith.cmpi ne, %21, %22 : vector<1x256xi32>
    %c127_i32 = arith.constant 127 : i32
    %24 = vector.broadcast %c127_i32 : i32 to vector<1x256xi32>
    %25 = arith.cmpi ne, %21, %24 : vector<1x256xi32>
    %c0_7 = arith.constant 0 : index
    %c0_8 = arith.constant 0 : index
    %26 = vector.load %arg2[%c0_7, %c0_8] : memref<16x32xbf16, #tpu.memory_space<vmem>>, vector<16x32xbf16>
    %cst = arith.constant dense<0.000000e+00> : vector<16x256xf32>
    %27 = tpu.matmul %26, %0, %cst {dimension_numbers = #tpu.dot_dimension_numbers<[1], [0], [0], [1], [0, 0, 1, 1], [], []>} : vector<16x32xbf16>, vector<32x256xbf16>, vector<16x256xf32> -> vector<16x256xf32>
    %28 = vector.broadcast %2 : vector<16x1xf32> to vector<16x256xf32>
    %29 = arith.addf %27, %28 : vector<16x256xf32>
    %cst_9 = arith.constant 0.000000e+00 : f32
    %30 = vector.broadcast %cst_9 : f32 to vector<16x256xf32>
    %31 = arith.maximumf %29, %30 : vector<16x256xf32>
    %c1_i32_10 = arith.constant 1 : i32
    %32 = tpu.dynamic_rotate %31 by %c1_i32_10 dim 1 : vector<16x256xf32>, i32 -> vector<16x256xf32>
    %cst_11 = arith.constant 0.000000e+00 : f32
    %33 = vector.shape_cast %23 : vector<1x256xi1> to vector<1x256xi1>
    %34 = vector.broadcast %33 : vector<1x256xi1> to vector<16x256xi1>
    %35 = vector.broadcast %cst_11 : f32 to vector<16x256xf32>
    %36 = arith.select %34, %32, %35 : vector<16x256xi1>, vector<16x256xf32>
    %c255_i32 = arith.constant 255 : i32
    %37 = tpu.dynamic_rotate %31 by %c255_i32 dim 1 : vector<16x256xf32>, i32 -> vector<16x256xf32>
    %cst_12 = arith.constant 0.000000e+00 : f32
    %38 = vector.shape_cast %25 : vector<1x256xi1> to vector<1x256xi1>
    %39 = vector.broadcast %38 : vector<1x256xi1> to vector<16x256xi1>
    %40 = vector.broadcast %cst_12 : f32 to vector<16x256xf32>
    %41 = arith.select %39, %37, %40 : vector<16x256xi1>, vector<16x256xf32>
    %42 = tpu.concatenate %36, %31, %41 in 0 : vector<16x256xf32>, vector<16x256xf32>, vector<16x256xf32> -> vector<48x256xf32>
    %43 = arith.truncf %42 : vector<48x256xf32> to vector<48x256xbf16>
    %c0_13 = arith.constant 0 : index
    %c0_14 = arith.constant 0 : index
    %44 = vector.load %arg3[%c0_13, %c0_14] : memref<16x48xbf16, #tpu.memory_space<vmem>>, vector<16x48xbf16>
    %cst_15 = arith.constant dense<0.000000e+00> : vector<16x256xf32>
    %45 = tpu.matmul %44, %43, %cst_15 {dimension_numbers = #tpu.dot_dimension_numbers<[1], [0], [0], [1], [0, 0, 1, 1], [], []>} : vector<16x48xbf16>, vector<48x256xbf16>, vector<16x256xf32> -> vector<16x256xf32>
    %46 = vector.broadcast %3 : vector<16x1xf32> to vector<16x256xf32>
    %47 = arith.addf %45, %46 : vector<16x256xf32>
    %cst_16 = arith.constant 0.000000e+00 : f32
    %48 = vector.broadcast %cst_16 : f32 to vector<16x256xf32>
    %49 = arith.maximumf %47, %48 : vector<16x256xf32>
    %c0_17 = arith.constant 0 : index
    %c0_18 = arith.constant 0 : index
    %50 = vector.load %arg4[%c0_17, %c0_18] : memref<32x16xbf16, #tpu.memory_space<vmem>>, vector<32x16xbf16>
    %51 = arith.truncf %49 : vector<16x256xf32> to vector<16x256xbf16>
    %cst_19 = arith.constant dense<0.000000e+00> : vector<32x256xf32>
    %52 = tpu.matmul %50, %51, %cst_19 {dimension_numbers = #tpu.dot_dimension_numbers<[1], [0], [0], [1], [0, 0, 1, 1], [], []>} : vector<32x16xbf16>, vector<16x256xbf16>, vector<32x256xf32> -> vector<32x256xf32>
    %53 = vector.broadcast %4 : vector<32x1xf32> to vector<32x256xf32>
    %54 = arith.addf %52, %53 : vector<32x256xf32>
    %55 = arith.extf %0 : vector<32x256xbf16> to vector<32x256xf32>
    %56 = arith.addf %54, %55 : vector<32x256xf32>
    %cst_20 = arith.constant 0.000000e+00 : f32
    %57 = vector.broadcast %cst_20 : f32 to vector<32x256xf32>
    %58 = arith.maximumf %56, %57 : vector<32x256xf32>
    %59 = arith.truncf %58 : vector<32x256xf32> to vector<32x256xbf16>
    %c0_21 = arith.constant 0 : index
    %c0_22 = arith.constant 0 : index
    %60 = vector.load %arg6[%c0_21, %c0_22] : memref<32x256xbf16, #tpu.memory_space<vmem>>, vector<32x256xbf16>
    tpu.vector_store %arg6[%c0_21, %c0_22], %59 {strides = array<i32>} : memref<32x256xbf16, #tpu.memory_space<vmem>>, vector<32x256xbf16>,
    return
  }
  func.func @transform_0(%arg0: i32) -> (i32, i32) {
    %c0_i32 = arith.constant 0 : i32
    %c0_i32_0 = arith.constant 0 : i32
    return %c0_i32, %arg0 : i32, i32
  }
  func.func @transform_1(%arg0: i32) -> (i32, i32) {
    %c0_i32 = arith.constant 0 : i32
    %c0_i32_0 = arith.constant 0 : i32
    %c0_i32_1 = arith.constant 0 : i32
    return %c0_i32, %c0_i32_0 : i32, i32
  }
  func.func @transform_2(%arg0: i32) -> (i32, i32) {
    %c0_i32 = arith.constant 0 : i32
    %c0_i32_0 = arith.constant 0 : i32
    %c0_i32_1 = arith.constant 0 : i32
    return %c0_i32, %c0_i32_0 : i32, i32
  }
  func.func @transform_3(%arg0: i32) -> (i32, i32) {
    %c0_i32 = arith.constant 0 : i32
    %c0_i32_0 = arith.constant 0 : i32
    %c0_i32_1 = arith.constant 0 : i32
    return %c0_i32, %c0_i32_0 : i32, i32
  }
  func.func @transform_4(%arg0: i32) -> (i32, i32) {
    %c0_i32 = arith.constant 0 : i32
    %c0_i32_0 = arith.constant 0 : i32
    %c0_i32_1 = arith.constant 0 : i32
    return %c0_i32, %c0_i32_0 : i32, i32
  }
  func.func @transform_5(%arg0: i32) -> (i32, i32) {
    %c0_i32 = arith.constant 0 : i32
    %c0_i32_0 = arith.constant 0 : i32
    return %c0_i32, %arg0 : i32, i32
  }
}

</mosaic_0001>

<bundles_post_ra>
// kernel: tpu_custom_call.1
= control target key start
LH: loop header
LB: loop body
LE: loop exit
PB: predicated region body
PF: predicated region fallthrough
CT: control target
= control target key end

     0   :  { %10 = vsyncpa [#allocation3], 0  ;;  %s1229_s0 = inlined_call_operand.hbm [shape: bf16[32,512], index: 0, kind: input, shape index: {}]   ;;  %s1230_s1 = inlined_call_operand.vmem [shape: bf16[16,32], index: 1, kind: input, shape index: {}]   ;;  %s1231_s2 = inlined_call_operand.vmem [shape: bf16[16,48], index: 2, kind: input, shape index: {}]   ;;  %s1232_s3 = inlined_call_operand.vmem [shape: bf16[32,16], index: 3, kind: input, shape index: {}]   ;;  %s1233_s4 = inlined_call_operand.vmem [shape: f32[32,3], index: 4, kind: input, shape index: {}]   ;;  %s1234_s5 = inlined_call_operand.hbm [shape: bf16[32,512], index: 5, kind: output, shape index: {}]  }
   0x1   :  { %12 = vsyncpa [#allocation3 + $0x1], 0 }
   0x2   :  { %13 = vsyncpa [#allocation4], 0 }
   0x3   :  { %15 = vsyncpa [#allocation4 + $0x1], 0  ;;  %s995_s18 = smov 0   ;;  %s997_s19 = smov 0  }
   0x4   :  { %s999_s20 = smov 0   ;;  %s1001_s21 = smov 0  }
   0x5 LB: > { %s1016_s22 = sadd.s32 4294967295, %s950_s21   ;;  %s720_s23 = sadd.s32 4294967294, %s950_s21   ;;  %s950_s21 = sphi %s1001_s21, %s1252_s21   ;;  %s946_s20 = sphi %s999_s20, %s1251_s20   ;;  %s942_s19 = sphi %s997_s19, %s1250_s19   ;;  %s938_s18 = sphi %s995_s18, %s1249_s18  }
   0x6   : > { %s1020_s24 = sadd.s32 1, %s950_s21   ;;  %s28_s25 = sadd.s32 1, %s946_s20 }
   0x7   : > { %s25_s26 = ssub.s32 %s950_s21, %s1020_s24  ;;  %p35_p0 = scmp.ne.s32.totalorder %s946_s20, %s942_s19 }
   0x8   : > { %p26_p1 = scmp.eq.s32.totalorder %s25_s26, 0  ;;  %p36_p2 = scmp.eq.s32.totalorder %s950_s21, 0 }
   0x9   : > { %p41_p3 = scmp.ne.s32.totalorder %s942_s19, %s938_s18  ;;  %p42_p4 = scmp.eq.s32.totalorder %s1016_s22, 0 }
   0xa   : > { %s1032_s27 = scalar_select %p26_p1, %s946_s20, %s28_s25  }
   0xb   : > { %p1034_p5 = por %p36_p2, %p35_p0  ;;  %p1038_p6 = por %p42_p4, %p41_p3 }
   0xc   : > { %p149_p7 = scmp.eq.s32.totalorder %s1016_s22, 1  ;;  %p155_p8 = scmp.eq.s32.totalorder %s720_s23, 1 }
   0xd   : > { %s1238_s29 = scalar_select %p1038_p6, 1, 0 }
   0xe   : > { %p780_p10 = scmp.lt.s32.totalorder %s950_s21, 2  ;;  %p1045_p11 = por %p149_p7, %p35_p0 }
   0xf   : > { %p1049_p12 = por %p155_p8, %p41_p3  ;;  %s187_s7 = sand.u32 1, %s946_s20  }
  0x10   : > { %s1239_s30 = scalar_select %p1045_p11, 1, 0 }
  0x11   : > { %s1240_s6 = scalar_select %p1049_p12, 1, 0 }
  0x12   : > { %s762_s8 = sshll.u32 %s950_s21, 7  ;;  %s723_s9 = sshll.u32 %s187_s7, 5 }
  0x13   : > { %s1058_s12 = scalar_lea.hbm %s1229_s0, %s762_s8  ;;  %s191_s13 = scalar_lea.vmem [#allocation2], %s723_s9 }
  0x14   : > { %s198_s14 = sshll.u32 %s191_s13, 4  ;;  %p1062_p13 = pnand %p780_p10, %p1034_p5  ;;  %s1066_s14 = int_to_ptr.vmem [resolvable:$true] %s198_s14 }
  0x15   : > { %s1069_s16 = scalar_lea.sflag [#allocation3], %s187_s7  ;;  %s858_s17 = scalar_lea.hbm %s1058_s12, 512 }
  0x16   : > { %p859_p1 = scmp.ne.s32.totalorder %s1058_s12, %s858_s17  ;;  %p860_p2 = pneg %p1062_p13 }
  0x17   : > { %s863_s26 = scalar_lea.hbm %s1229_s0, 1024  ;;  %p864_p5 = scmp.lt.s32.totalorder %s1058_s12, %s1229_s0 }
  0x18   : > { %p861_p3 = pnand %p860_p2, %p859_p1  ;;  %p865_p7 = scmp.lt.s32.totalorder %s863_s26, %s858_s17 }
  0x1a   : > { %p862_p4 = pneg %p861_p3  ;;  %p866_p8 = por %p865_p7, %p864_p5 }
  0x1c   : > { %p867_p10 = pnand %p866_p8, %p862_p4 }
  0x1e   : > { %870 = shalt.err (!%p867_p10)
}
  0x1f   : > { %s871_s7 = scalar_lea.vmem %s1066_s14, 512  ;;  %s952_s9 = smov [#allocation2]  }
  0x20   : > { %p872_p9 = scmp.ne.s32.totalorder %s1066_s14, %s871_s7  ;;  %s876_s10 = sshll.u32 %s952_s9, 4  ;;  %s877_s10 = int_to_ptr.vmem [resolvable:$false] %s876_s10 }
  0x21   : > { %s878_s11 = scalar_lea.vmem %s877_s10, 1024  ;;  %p879_p3 = scmp.lt.s32.totalorder %s1066_s14, %s877_s10 }
  0x22   : > { %p874_p0 = pnand %p872_p9, %p860_p2  ;;  %p880_p12 = scmp.lt.s32.totalorder %s878_s11, %s871_s7 }
  0x24   : > { %p875_p1 = pneg %p874_p0  ;;  %p881_p11 = por %p880_p12, %p879_p3 }
  0x26   : > { %p882_p6 = pnand %p881_p11, %p875_p1 }
  0x28   : > { %885 = shalt.err (!%p882_p6)
}
  0x29   : > { %s953_s13 = smov 256   ;;  %s954_s17 = smov 128  }
  0x2a   : > { %s955_s23 = smov 8   ;;  %p206_p9 = scmp.lt.s32.totalorder %s950_s21, 3 }
  0x2b   : > { %775 = dma.hbm_to_vmem [thread:$0]  (!%p1062_p13), %s1058_s12, 512, %s1066_s14, %s1069_s16, %s953_s13, %s954_s17, %s955_s23  }
  0x2c   : > { %p1242_p0 = scmp.ge.s32.totalorder %s950_s21, 1 }
  0x2e   : > { %p207_p2 = pnand %p1242_p0, %p206_p9 }
  0x2f   : > { %s1094_s25 = sand.u32 (!%p207_p2), 1, %s942_s19   ;;  %p1243_p6 = scmp.ne.s32.totalorder (!%p207_p2), %s1238_s29, 0 }
  0x30   : > { %210 = sbr.rel (%p207_p2) target bundleno = 843 (0x34b), region = 40  ;;  %s727_s26 = sshll.u32 (!%p207_p2), %s1094_s25, 5 }
  0x31   : > { %s213_s28 = scalar_lea.sflag (!%p207_p2), [#allocation3], %s1094_s25  ;;  %s216_s8 = scalar_lea.vmem (!%p207_p2), [#allocation2], %s727_s26 }
  0x35   : > { %929 = dma.done.wait (%p1243_p6), %s213_s28, 512  }
  0x36   : > { %931 = vsyncadd (%p1243_p6), %s213_s28, 4294966784  ;;  %v956_v0 = vmov 0   ;;  %v1107_v1 = vld [vmem:[%s216_s8 + $0x10] sm:$0xff]  ;;  %v1109_v2 = vld [vmem:[%s216_s8 + $0x18] sm:$0xff]  ;;  %vm322_vm0 = vcmask 261120   ;;  %s957_s9 = smov 1   ;;  %v254_v31 = vlaneseq }
  0x37   : > { %358 = vmatprep.mubr.bf16.mxu1 %v956_v0  ;;  %825 = vset.pattern.permute.xlu0 %v956_v0  ;;  %v1111_v3 = vld [vmem:[%s216_s8] sm:$0xff]  ;;  %v733_v4 = vcombine.high %v1107_v1, %v1109_v2  ;;  %v732_v5 = vcombine.low %v1107_v1, %v1109_v2  ;;  %v1117_v6 = vld [vmem:[%s216_s8 + $0x8] sm:$0xff]  ;;  %s958_s10 = smov 127   ;;  %v959_v30 = vmov 1   ;;  %vm436_vm11 = vcmask 392192   ;;  %v252_v62 = vld [vmem:[%s1233_s4 + $0x10] sm:$0xff] }
  0x38   : > { %560 = vmatprep.mubr.bf16.mxu0 %v956_v0  ;;  %v731_v7 = vcombine.high %v1111_v3, %v1117_v6  ;;  %v1124_v8 = vld [vmem:[%s1233_s4] sm:$0xff]  ;;  %v1129_v9 = vld [vmem:[%s1233_s4 + $0x8] sm:$0xff]  ;;  %v730_v10 = vcombine.low %v1111_v3, %v1117_v6  ;;  %847 = vset.pattern.permute.xlu1 %v959_v30  ;;  %v255_v32 = vand.u32 127, %v254_v31  ;;  %v960_v61 = vmov 2   ;;  %v253_v63 = vld [vmem:[%s1233_s4 + $0x18] sm:$0xff]  ;;  %s242_s16 = scalar_lea.vmem [#allocation5], %s727_s26 }
  0x39   : > { %338 = vmatprep.subr.bf16.mxu1 %v733_v4  ;;  %289 = vperm.xlu0 %825, %v1124_v8   ;;  %v854_v11 = vld [vmem:[%s1230_s1] sm:$0xff]   ;;  %vm521_vm12 = vcmask 130048   ;;  %s647_s26 = sshll.u32 %s242_s16, 4  ;;  %s767_s7 = sshll.u32 %s1016_s22, 7  ;;  %s1181_s26 = int_to_ptr.vmem [resolvable:$true] %s647_s26 }
  0x3a   : > { %339 = vmatpush1.bf16.msra.mxu1 %v732_v5  ;;  %v256_v33 = vadd.s32 128, %v255_v32  ;;  %vm402_vm1 = vcmp.lt.s32.totalorder %v255_v32, 127  ;;  %vm283_vm3 = vcmp.ne.s32.totalorder %v255_v32, 127  ;;  %vm381_vm5 = vcmp.lt.s32.totalorder %v255_v32, 1  ;;  %v855_v60 = vld [vmem:[%s1231_s2] sm:$0xff]   ;;  %s1186_s11 = scalar_lea.hbm %s1234_s5, %s767_s7  ;;  %s634_s13 = scalar_lea.sflag [#allocation4], %s1094_s25 }
  0x3b   : > { %340 = vmatprep.subr.bf16.mxu1 %v731_v7  ;;  %vm739_vm6 = vmpackc.low %vm283_vm3, %vm283_vm3  ;;  %vm281_vm9 = vcmp.ne.s32.totalorder %v255_v32, 0  ;;  %v583_v32 = vunpack.c.l.bf16 %v1117_v6  ;;  %s886_s17 = scalar_lea.vmem %s1181_s26, 512  ;;  %p1246_p12 = scmp.ne.s32.totalorder %s1239_s30, 0 }
  0x3c   : > { %v268_v35 = vand.u32 127, %v256_v33  ;;  %vm745_vm10 = vmpackc.low %vm281_vm9, %vm281_vm9  ;;  %p887_p11 = scmp.ne.s32.totalorder %s1181_s26, %s886_s17  ;;  %s961_s22 = smov [#allocation5]  }
  0x3d   : > { %294 = vperm.xlu0 %825, %v1129_v9   ;;  %s890_s23 = sshll.u32 %s961_s22, 4  ;;  %s891_s23 = int_to_ptr.vmem [resolvable:$false] %s890_s23 }
  0x3e   : > { %341 = vmatpush1.bf16.msra.mxu1 %v730_v10  ;;  %vm1141_vm2 = vcmp.ne.s32.totalorder %v268_v35, 127  ;;  %vm282_vm7 = vcmp.ne.s32.totalorder %v268_v35, 0  ;;  %v584_v35 = vunpack.c.h.bf16 %v1117_v6  ;;  %p888_p13 = pnand %p887_p11, %p1246_p12  ;;  %s892_s28 = scalar_lea.vmem %s891_s23, 1024 }
  0x3f   : > { %vm736_vm4 = vmpackc.low %vm1141_vm2, %vm1141_vm2  ;;  %p893_p5 = scmp.lt.s32.totalorder %s1181_s26, %s891_s23  ;;  %p894_p7 = scmp.lt.s32.totalorder %s892_s28, %s886_s17 }
  0x40   : > { %vm742_vm8 = vmpackc.low %vm282_vm7, %vm282_vm7  ;;  %p889_p4 = pneg %p888_p13 }
  0x41   : > { %734 = vmatmul.mubr.msk.bf16.vlgmr.msra.gmra.mxu1 %vm322_vm0, %v854_v11  ;;  %846 = vset.pattern.permute.xlu0 %v959_v30  ;;  %p895_p8 = por %p894_p7, %p893_p5 }
  0x42   : > { %472 = vmatprep.mubr.bf16.mxu1 %v956_v0 }
  0x43   : > { %p896_p10 = pnand %p895_p8, %p889_p4 }
  0xb4   : > { %v290_v12 = vpop.permute.xlu0 %289 }
  0xb8   : > { %v295_v16 = vpop.permute.xlu0 %294 }
 0x101   : > { %v360_v13 = vpop.f32.mrf.mxu1 }
 0x102   : > { %v361_v15 = vadd.f32 %v360_v13, %v290_v12 }
 0x103   : > { %v362_v14 = vpop.f32.mrf.mxu1 }
 0x104   : > { %v363_v17 = vadd.f32 %v362_v14, %v290_v12  ;;  %v369_v21 = vmax.f32 %v361_v15, 0.0 }
 0x105   : > { %v364_v18 = vpop.f32.mrf.mxu1 }
 0x106   : > { %v365_v19 = vadd.f32 %v364_v18, %v295_v16  ;;  %v370_v24 = vmax.f32 %v363_v17, 0.0 }
 0x107   : > { %v366_v20 = vpop.f32.mrf.mxu1 }
 0x108   : > { %v371_v22 = vmax.f32 %v365_v19, 0.0  ;;  %v367_v23 = vadd.f32 %v366_v20, %v295_v16 }
 0x10a   : > { %v417_v25 = vpack.c.bf16 %v371_v22, %v369_v21  ;;  %v372_v26 = vmax.f32 %v367_v23, 0.0  ;;  %v836_v27 = vpack.i.bf16 %v371_v22, %v369_v21  ;;  %v856_v21 = vld [vmem:[%s1232_s3] sm:$0xff]   ;;  %v857_v22 = vld [vmem:[%s1232_s3 + $0x8] sm:$0xff]   ;;  %v581_v23 = vunpack.c.l.bf16 %v1111_v3 }
 0x10c   : > { %837 = vrot.lane.b32.xlu0 %v836_v27, %s957_s9  ;;  %827 = vrot.lane.b32.xlu1 %v836_v27, %s958_s10  ;;  %v418_v28 = vpack.c.bf16 %v372_v26, %v370_v24  ;;  %v831_v29 = vpack.i.bf16 %v372_v26, %v370_v24  ;;  %v582_v27 = vunpack.c.h.bf16 %v1111_v3 }
 0x110   : > { %832 = vrot.lane.b32.xlu1 %v831_v29, %s958_s10  ;;  %424 = vperm.xlu0 %846, %v1124_v8  }
 0x114   : > { %842 = vrot.lane.b32.xlu1 %v831_v29, %s957_s9  ;;  %849 = vset.pattern.permute.xlu0 %v960_v61 }
 0x115   : > { %498 = vperm.xlu0 %849, %v1129_v9  }
 0x118   : > { %428 = vperm.xlu1 %847, %v1129_v9  }
 0x11c   : > { %848 = vset.pattern.permute.xlu1 %v960_v61 }
 0x11d   : > { %494 = vperm.xlu1 %848, %v1124_v8  }
 0x121   : > { %503 = vperm.xlu1 %848, %v252_v62  }
 0x125   : > { %508 = vperm.xlu1 %848, %v253_v63  }
 0x17e   : > { %v828_v34 = vpop.permute.xlu1 %827  ;;  %v838_v42 = vpop.permute.xlu0 %837 }
 0x17f   : > { %v830_v38 = vunpack.i.h.bf16 %v828_v34  ;;  %v829_v39 = vunpack.i.l.bf16 %v828_v34  ;;  %v840_v50 = vunpack.i.h.bf16 %v838_v42  ;;  %v839_v51 = vunpack.i.l.bf16 %v838_v42 }
 0x182   : > { %v833_v36 = vpop.permute.xlu1 %832 }
 0x183   : > { %v835_v40 = vunpack.i.h.bf16 %v833_v36  ;;  %v834_v41 = vunpack.i.l.bf16 %v833_v36 }
 0x185   : > { %v403_v43 = vsel %vm402_vm1, %v829_v39, %v834_v41  ;;  %v404_v44 = vsel %vm402_vm1, %v830_v38, %v835_v40  ;;  %v405_v45 = vsel %vm402_vm1, %v834_v41, %v829_v39  ;;  %v406_v46 = vsel %vm402_vm1, %v835_v40, %v830_v38 }
 0x186   : > { %v737_v47 = vpack.c.bf16 %v406_v46, %v405_v45  ;;  %v740_v48 = vpack.c.bf16 %v404_v44, %v403_v43  ;;  %v843_v49 = vpop.permute.xlu1 %842  ;;  %v585_v38 = vunpack.c.l.bf16 %v1107_v1  ;;  %v586_v46 = vunpack.c.h.bf16 %v1107_v1 }
 0x187   : > { %v845_v52 = vunpack.i.h.bf16 %v843_v49  ;;  %v844_v53 = vunpack.i.l.bf16 %v843_v49 }
 0x188   : > { %738 = vmatprep.subr.msk.bf16.mxu1 %vm736_vm4, %v737_v47 }
 0x189   : > { %v383_v54 = vsel %vm381_vm5, %v840_v50, %v845_v52  ;;  %v382_v55 = vsel %vm381_vm5, %v839_v51, %v844_v53  ;;  %741 = vmatpush1.bf16.msk.msra.mxu1 %vm739_vm6, %v740_v48  ;;  %v385_v56 = vsel %vm381_vm5, %v845_v52, %v840_v50  ;;  %v384_v57 = vsel %vm381_vm5, %v844_v53, %v839_v51 }
 0x18a   : > { %452 = vmatprep.subr.bf16.mxu1 %v418_v28  ;;  %v743_v58 = vpack.c.bf16 %v383_v54, %v382_v55  ;;  %v746_v59 = vpack.c.bf16 %v385_v56, %v384_v57  ;;  %v587_v48 = vunpack.c.l.bf16 %v1109_v2  ;;  %v588_v57 = vunpack.c.h.bf16 %v1109_v2 }
 0x18b   : > { %v425_v10 = vpop.permute.xlu0 %424 }
 0x18d   : > { %453 = vmatpush1.bf16.msra.mxu1 %v417_v25 }
 0x18e   : > { %744 = vmatprep.subr.msk.bf16.mxu1 %vm742_vm8, %v743_v58 }
 0x190   : > { %v499_v29 = vpop.permute.xlu0 %498 }
 0x191   : > { %747 = vmatpush1.bf16.msk.msra.mxu1 %vm745_vm10, %v746_v59 }
 0x193   : > { %v429_v7 = vpop.permute.xlu1 %428 }
 0x194   : > { %748 = vmatmul.mubr.msk.bf16.vlgmr.msra.gmra.mxu1 %vm436_vm11, %v855_v60 }
 0x198   : > { %v495_v24 = vpop.permute.xlu1 %494 }
 0x19c   : > { %v504_v36 = vpop.permute.xlu1 %503 }
 0x1a0   : > { %v509_v52 = vpop.permute.xlu1 %508 }
 0x254   : > { %v474_v4 = vpop.f32.mrf.mxu1 }
 0x255   : > { %v475_v8 = vadd.f32 %v474_v4, %v425_v10 }
 0x256   : > { %v476_v5 = vpop.f32.mrf.mxu1 }
 0x257   : > { %v477_v12 = vadd.f32 %v476_v5, %v425_v10  ;;  %v483_v18 = vmax.f32 %v475_v8, 0.0 }
 0x258   : > { %v478_v11 = vpop.f32.mrf.mxu1 }
 0x259   : > { %v479_v13 = vadd.f32 %v478_v11, %v429_v7  ;;  %v484_v16 = vmax.f32 %v477_v12, 0.0 }
 0x25a   : > { %v480_v14 = vpop.f32.mrf.mxu1 }
 0x25b   : > { %v481_v9 = vadd.f32 %v480_v14, %v429_v7  ;;  %v485_v15 = vmax.f32 %v479_v13, 0.0 }
 0x25d   : > { %v486_v17 = vmax.f32 %v481_v9, 0.0  ;;  %v491_v20 = vpack.c.bf16 %v485_v15, %v483_v18 }
 0x25f   : > { %v492_v19 = vpack.c.bf16 %v486_v17, %v484_v16 }
 0x261   : > { %542 = vmatprep.subr.bf16.mxu0 %v492_v19 }
 0x262   : > { %543 = vmatpush1.bf16.msra.mxu0 %v491_v20 }
 0x265   : > { %751 = vmatmul.mubr.msk.bf16.vlgmr.msra.gmra.mxu0 %vm521_vm12, %v856_v21 }
 0x266   : > { %570 = vmatprep.mubr.bf16.mxu0 %v956_v0 }
 0x26d   : > { %752 = vmatmul.mubr.msk.bf16.gmra.mxu0 %vm521_vm12, %v857_v22 }
 0x325   : > { %v562_v25 = vpop.f32.mrf.mxu0 }
 0x326   : > { %v563_v26 = vadd.f32 %v562_v25, %v495_v24 }
 0x327   : > { %v564_v28 = vpop.f32.mrf.mxu0 }
 0x328   : > { %v589_v30 = vadd.f32 %v581_v23, %v563_v26  ;;  %v565_v31 = vadd.f32 %v564_v28, %v495_v24 }
 0x329   : > { %v566_v33 = vpop.f32.mrf.mxu0 }
 0x32a   : > { %v590_v0 = vadd.f32 %v582_v27, %v565_v31  ;;  %v567_v34 = vadd.f32 %v566_v33, %v499_v29  ;;  %v597_v39 = vmax.f32 %v589_v30, 0.0 }
 0x32b   : > { %v568_v37 = vpop.f32.mrf.mxu0 }
 0x32c   : > { %v598_v40 = vmax.f32 %v590_v0, 0.0  ;;  %v591_v41 = vadd.f32 %v583_v32, %v567_v34  ;;  %v569_v3 = vadd.f32 %v568_v37, %v499_v29 }
 0x32d   : > { %v572_v42 = vpop.f32.mrf.mxu0 }
 0x32e   : > { %v763_v43 = vpack.c.bf16 %v598_v40, %v597_v39  ;;  %v592_v44 = vadd.f32 %v584_v35, %v569_v3  ;;  %v573_v45 = vadd.f32 %v572_v42, %v504_v36  ;;  %v599_v6 = vmax.f32 %v591_v41, 0.0 }
 0x32f   : > { %v574_v47 = vpop.f32.mrf.mxu0 }
 0x330   : > { %629 = vst [vmem:[%s242_s16] sm:$0xff] %v763_v43  ;;  %v600_v49 = vmax.f32 %v592_v44, 0.0  ;;  %v593_v50 = vadd.f32 %v585_v38, %v573_v45  ;;  %v575_v51 = vadd.f32 %v574_v47, %v504_v36 }
 0x331   : > { %v576_v53 = vpop.f32.mrf.mxu0 }
 0x332   : > { %v764_v54 = vpack.c.bf16 %v600_v49, %v599_v6  ;;  %v594_v55 = vadd.f32 %v586_v46, %v575_v51  ;;  %v577_v56 = vadd.f32 %v576_v53, %v509_v52  ;;  %v601_v1 = vmax.f32 %v593_v50, 0.0 }
 0x333   : > { %v578_v58 = vpop.f32.mrf.mxu0 }
 0x334   : > { %630 = vst [vmem:[%s242_s16 + $0x8] sm:$0xff] %v764_v54  ;;  %v602_v59 = vmax.f32 %v594_v55, 0.0  ;;  %v595_v60 = vadd.f32 %v587_v48, %v577_v56  ;;  %v579_v61 = vadd.f32 %v578_v58, %v509_v52 }
 0x336   : > { %v765_v62 = vpack.c.bf16 %v602_v59, %v601_v1  ;;  %v596_v63 = vadd.f32 %v588_v57, %v579_v61  ;;  %v603_v4 = vmax.f32 %v595_v60, 0.0 }
 0x338   : > { %631 = vst [vmem:[%s242_s16 + $0x10] sm:$0xff] %v765_v62  ;;  %v604_v2 = vmax.f32 %v596_v63, 0.0 }
 0x33a   : > { %v766_v5 = vpack.c.bf16 %v604_v2, %v603_v4 }
 0x33c   : > { %632 = vst [vmem:[%s242_s16 + $0x18] sm:$0xff] %v766_v5 }
 0x33d   : > { %899 = shalt.err (!%p896_p10)
}
 0x33e   : > { %s900_s8 = scalar_lea.hbm %s1186_s11, 512  ;;  %s904_s14 = scalar_lea.hbm %s1234_s5, 1024 }
 0x33f   : > { %p901_p1 = scmp.ne.s32.totalorder %s1186_s11, %s900_s8  ;;  %p905_p0 = scmp.lt.s32.totalorder %s1186_s11, %s1234_s5 }
 0x340   : > { %p906_p2 = scmp.lt.s32.totalorder %s904_s14, %s900_s8 }
 0x341   : > { %p902_p3 = pnand %p901_p1, %p1246_p12 }
 0x342   : > { %p907_p6 = por %p906_p2, %p905_p0 }
 0x343   : > { %p903_p9 = pneg %p902_p3 }
 0x345   : > { %p908_p11 = pnand %p907_p6, %p903_p9 }
 0x347   : > { %911 = shalt.err (!%p908_p11)
}
 0x348   : > { %s962_s7 = smov 128   ;;  %s963_s9 = smov 256  }
 0x349   : > { %s964_s10 = smov 8  }
 0x34a   : > { %770 = dma.vmem_to_hbm [thread:$0]  (%p1246_p12), %s1181_s26, 512, %s1186_s11, %s634_s13, %s962_s7, %s963_s9, %s964_s10  }
 0x34b PF: > { %s662_s17 = sand.u32 1, %s938_s18   ;;  %p1247_p13 = scmp.ne.s32.totalorder %s1240_s6, 0 }
 0x34c   : > { %p1248_p4 = scmp.ge.s32.totalorder %s950_s21, 2  ;;  %s663_s22 = scalar_lea.sflag [#allocation4], %s662_s17 }
 0x34e   : > { %p777_p5 = pnand %p1248_p4, %p1247_p13 }
 0x350   : > { %p778_p7 = pneg %p777_p5 }
 0x352   : > { %933 = dma.done.wait (%p778_p7), %s663_s22, 512  }
 0x353   : > { %935 = vsyncadd (%p778_p7), %s663_s22, 4294966784  ;;  %p18_p8 = scmp.ge.s32.totalorder %s1020_s24, 4   ;;  %s1249_s18 = smov %s942_s19 }
 0x354   : > { %s1250_s19 = smov %s946_s20  ;;  %s1251_s20 = smov %s1032_s27 }
 0x355   : > { %s1252_s21 = smov %s1020_s24  ;;  %20 = sbr.rel (!%p18_p8) target bundleno = 5 (0x5), region = 85 }
 0x35a   :  { %668 = vsyncpa [#allocation3], 1 }
 0x35b   :  { %670 = vsyncpa [#allocation3 + $0x1], 1 }
 0x35c   :  { %671 = vsyncpa [#allocation4], 1 }
 0x35d   :  { %673 = vsyncpa [#allocation4 + $0x1], 1 }

</bundles_post_ra>
